<compile_context>
chip_gen: v5e
topology: v5e:2x2
jax: 0.10.0
libtpu: 0.0.40
codegen_flags: <defaults>
</compile_context>

<pallas_src>
import jax
import jax.numpy as jnp
import numpy as np
from jax.experimental import pallas as pl
from jax.experimental.pallas import tpu as pltpu


_LANE = 128
_UNROLL_C_MAX = 32            # fully unroll the channel loop below this many classes
_CHUNK = 8                    # channel chunk for the large-C path
_TARGET_ROWS = 256            # 256 rows x 128 lanes = 32768 spatial elements per grid step
_WS_BUDGET_BYTES = 24 << 20   # double-buffered per-step working-set budget (fits all gens)


def _round_up(x, m):
    return ((x + m - 1) // m) * m


def _labelmix_kernel(rand_ref, label_ref, fake_ref, real_ref, mixed_ref, mask_ref):
    """One (batch, row-tile) block per grid step.

    rand_ref : SMEM (C,)               per-class random binary value (0./1.)
    label_ref: VMEM (1, C,  R, 128)    semantic label logits / one-hot
    fake_ref : VMEM (1, Ci, R, 128)    fake image
    real_ref : VMEM (1, Ci, R, 128)    real image
    mixed_ref: VMEM (1, Ci, R, 128)    mixed output
    mask_ref : VMEM (1, 1,  R, 128)    binary mixing mask (float32)
    """
    C = label_ref.shape[1]

    # Running argmax over the channel axis while carrying the per-class random 0/1 value,
    # i.e. mask = class_rand[argmax_c label].  Strict '>' keeps argmax's first-max tie-break.
    run_max = label_ref[0, 0].astype(jnp.float32)                      # (R, 128)
    run_val = jnp.full(run_max.shape, rand_ref[0], dtype=jnp.float32)  # (R, 128)

    if C <= _UNROLL_C_MAX:
        for c in range(1, C):
            ch = label_ref[0, c].astype(jnp.float32)
            take = ch > run_max
            run_val = jnp.where(take, rand_ref[c], run_val)
            run_max = jnp.maximum(run_max, ch)
    else:
        nfull = (C - 1) // _CHUNK

        def body(i, carry):
            rm, rv = carry
            base = 1 + i * _CHUNK
            # Dense 8-channel chunk at a dynamic leading-dim offset (aligned (R,128) slabs).
            blk = label_ref[0, pl.ds(base, _CHUNK)].astype(jnp.float32)  # (CHUNK, R, 128)
            for j in range(_CHUNK):                                      # static inner unroll
                ch = blk[j]
                take = ch > rm
                rv = jnp.where(take, rand_ref[base + j], rv)
                rm = jnp.maximum(rm, ch)
            return rm, rv

        if nfull > 0:
            run_max, run_val = jax.lax.fori_loop(
                0, nfull, body, (run_max, run_val), unroll=2)
        for c in range(1 + nfull * _CHUNK, C):                           # static tail
            ch = label_ref[0, c].astype(jnp.float32)
            take = ch > run_max
            run_val = jnp.where(take, rand_ref[c], run_val)
            run_max = jnp.maximum(run_max, ch)

    mask_ref[0, 0] = run_val.astype(mask_ref.dtype)                     # (R, 128)

    f = fake_ref[0].astype(jnp.float32)                                 # (Ci, R, 128)
    r = real_ref[0].astype(jnp.float32)
    # FMA form: 3 VALU ops instead of 4 for m*real + (1-m)*fake.
    mixed_ref[0] = (f + run_val[None] * (r - f)).astype(mixed_ref.dtype)


def generate_labelmix_pallas(label, fake_image, real_image, class_rand):
    """Pallas equivalent of models.generate_labelmix.

    label      : (N, C,  H, W)
    fake_image : (N, Ci, H, W)
    real_image : (N, Ci, H, W)
    class_rand : (C,) float32 in {0., 1.}  (per-class torch.randint(0, 2) draw)
    returns (mixed_image (N, Ci, H, W), target_map (N, 1, H, W) float32)
    """
    # TODO(synk): torch's in-place loop can re-match pixels already rewritten to 0/1 when a
    #             later class id equals 0 or 1; here we use the intended per-class lookup
    #             semantics (randomness is not bit-reproducible across frameworks anyway).
    N, C, H, W = label.shape
    Ci = fake_image.shape[1]
    S = H * W
    rows_total = (S + _LANE - 1) // _LANE

    lab_b = jnp.dtype(label.dtype).itemsize
    img_b = jnp.dtype(fake_image.dtype).itemsize
    # label + fake + real + mixed + mask(f32), per row of 128 lanes.
    bytes_per_row = _LANE * (C * lab_b + 3 * Ci * img_b + 4)

    max_rows = max((_WS_BUDGET_BYTES // (2 * bytes_per_row)) // 8 * 8, 8)
    cap_rows = min(_TARGET_ROWS, max_rows)

    if rows_total <= cap_rows:
        tile_rows = rows_total          # full-extent block: no (8,128) divisibility issue
        rows_pad = rows_total
    else:
        tile_rows = cap_rows            # multiple of 8 by construction
        rows_pad = _round_up(rows_total, tile_rows)

    S_pad = rows_pad * _LANE

    lab = label.reshape(N, C, S)
    fak = fake_image.reshape(N, Ci, S)
    rea = real_image.reshape(N, Ci, S)
    if S_pad != S:
        # TODO(synk): ragged last tile could be handled in-kernel to avoid this HBM round trip;
        #             it never triggers for the power-of-two image sizes used by OASIS.
        pad = ((0, 0), (0, 0), (0, S_pad - S))
        lab = jnp.pad(lab, pad)
        fak = jnp.pad(fak, pad)
        rea = jnp.pad(rea, pad)

    lab = lab.reshape(N, C, rows_pad, _LANE)
    fak = fak.reshape(N, Ci, rows_pad, _LANE)
    rea = rea.reshape(N, Ci, rows_pad, _LANE)

    grid = (N, rows_pad // tile_rows)

    ws_bytes = 2 * bytes_per_row * tile_rows        # double-buffered per-step working set
    vmem_limit = int(min(48 << 20, max(32 << 20, int(ws_bytes * 1.5))))

    out_shape = (
        jax.ShapeDtypeStruct((N, Ci, rows_pad, _LANE), fake_image.dtype),
        jax.ShapeDtypeStruct((N, 1, rows_pad, _LANE), jnp.float32),
    )

    mixed, mask = pl.pallas_call(
        _labelmix_kernel,
        grid=grid,
        in_specs=[
            pl.BlockSpec(memory_space=pltpu.MemorySpace.SMEM),               # class_rand
            pl.BlockSpec((1, C, tile_rows, _LANE), lambda n, r: (n, 0, r, 0)),   # label
            pl.BlockSpec((1, Ci, tile_rows, _LANE), lambda n, r: (n, 0, r, 0)),  # fake
            pl.BlockSpec((1, Ci, tile_rows, _LANE), lambda n, r: (n, 0, r, 0)),  # real
        ],
        out_specs=(
            pl.BlockSpec((1, Ci, tile_rows, _LANE), lambda n, r: (n, 0, r, 0)),  # mixed
            pl.BlockSpec((1, 1, tile_rows, _LANE), lambda n, r: (n, 0, r, 0)),   # mask
        ),
        out_shape=out_shape,
        compiler_params=pltpu.CompilerParams(
            dimension_semantics=("parallel", "parallel"),
            vmem_limit_bytes=vmem_limit),
    )(class_rand.astype(jnp.float32), lab, fak, rea)

    mixed = mixed.reshape(N, Ci, S_pad)
    mask = mask.reshape(N, 1, S_pad)
    if S_pad != S:
        mixed = mixed[:, :, :S]
        mask = mask[:, :, :S]
    return mixed.reshape(N, Ci, H, W), mask.reshape(N, 1, H, W)


class OASIS_model:
    """JAX/Pallas stand-in for models.OASIS_model.

    Only the tensor computation defined inside the given module (generate_labelmix, used by
    mode='losses_D') is realized on-device; the GAN sub-networks are external and omitted.
    """

    def __init__(self, seed=0):
        # No in-module parameters exist in the provided code (netG/netD are external).
        self._key = jax.random.PRNGKey(seed)

    def generate_labelmix(self, label, fake_image, real_image):
        C = label.shape[1]
        key, self._key = jax.random.split(self._key)
        class_rand = jax.random.randint(key, (C,), 0, 2).astype(jnp.float32)
        mixed, mask = generate_labelmix_pallas(label, fake_image, real_image, class_rand)
        return mixed, mask, class_rand

    def forward(self, image, label, mode):
        if mode == "labelmix":
            return self.generate_labelmix(label, image, image)
        # TODO(synk): modes 'losses_G', 'losses_D', 'generate' need netG/netD/losses_computer
        #             which are not defined in the provided module.
        raise NotImplementedError(mode)


if __name__ == "__main__":
    key = jax.random.PRNGKey(0)
    k_lab, k_fake, k_real, k_rand, k_lab2, k_rand2 = jax.random.split(key, 6)

    # --- small-C (fully unrolled) path ---
    N, C, Ci, H, W = 2, 4, 3, 16, 16
    class_map = jax.random.randint(k_lab, (N, H, W), 0, C)
    label = jax.nn.one_hot(class_map, C, axis=1).astype(jnp.float32)     # (N, C, H, W)
    fake = jax.random.normal(k_fake, (N, Ci, H, W), dtype=jnp.float32)
    real = jax.random.normal(k_real, (N, Ci, H, W), dtype=jnp.float32)
    class_rand = jax.random.randint(k_rand, (C,), 0, 2).astype(jnp.float32)

    mixed, mask = generate_labelmix_pallas(label, fake, real, class_rand)
    mixed, mask = jax.block_until_ready((mixed, mask))

    tmap = jnp.argmax(label, axis=1, keepdims=True)
    mask_ref = class_rand[tmap]
    mixed_ref = mask_ref * real + (1.0 - mask_ref) * fake
    np.testing.assert_allclose(np.asarray(mask), np.asarray(mask_ref), rtol=0, atol=0)
    np.testing.assert_allclose(np.asarray(mixed), np.asarray(mixed_ref), rtol=1e-6, atol=1e-6)

    # --- large-C (chunked fori_loop) path ---
    C2 = 40
    class_map2 = jax.random.randint(k_lab2, (N, H, W), 0, C2)
    label2 = jax.nn.one_hot(class_map2, C2, axis=1).astype(jnp.float32)  # (N, C2, H, W)
    class_rand2 = jax.random.randint(k_rand2, (C2,), 0, 2).astype(jnp.float32)

    mixed2, mask2 = generate_labelmix_pallas(label2, fake, real, class_rand2)
    mixed2, mask2 = jax.block_until_ready((mixed2, mask2))

    tmap2 = jnp.argmax(label2, axis=1, keepdims=True)
    mask_ref2 = class_rand2[tmap2]
    mixed_ref2 = mask_ref2 * real + (1.0 - mask_ref2) * fake
    np.testing.assert_allclose(np.asarray(mask2), np.asarray(mask_ref2), rtol=0, atol=0)
    np.testing.assert_allclose(np.asarray(mixed2), np.asarray(mixed_ref2), rtol=1e-6, atol=1e-6)

    print("KERNEL_OK")
</pallas_src>

<mosaic_0001>
module attributes {stable_mosaic.version = 11 : i64} {
  func.func @_labelmix_kernel(%arg0: i32, %arg1: i32, %arg2: memref<4xf32, #tpu.memory_space<smem>>, %arg3: memref<1x4x2x128xf32, #tpu.memory_space<vmem>>, %arg4: memref<1x3x2x128xf32, #tpu.memory_space<vmem>>, %arg5: memref<1x3x2x128xf32, #tpu.memory_space<vmem>>, %arg6: memref<1x3x2x128xf32, #tpu.memory_space<vmem>>, %arg7: memref<1x1x2x128xf32, #tpu.memory_space<vmem>>) attributes {dimension_semantics = [#tpu.dimension_semantics<parallel>, #tpu.dimension_semantics<parallel>], iteration_bounds = array<i64: 2, 1>, scalar_prefetch = 0 : i64, scratch_operands = 0 : i64, tpu.core_type = #tpu.core_type<tc>, window_params = [{transform_indices = @transform_0, window_bounds = array<i64: 4>}, {transform_indices = @transform_1, window_bounds = array<i64: 1, 4, 2, 128>}, {transform_indices = @transform_2, window_bounds = array<i64: 1, 3, 2, 128>}, {transform_indices = @transform_3, window_bounds = array<i64: 1, 3, 2, 128>}, {transform_indices = @transform_4, window_bounds = array<i64: 1, 3, 2, 128>}, {transform_indices = @transform_5, window_bounds = array<i64: 1, 1, 2, 128>}]} {
    %c0 = arith.constant 0 : index
    %c0_0 = arith.constant 0 : index
    %c0_1 = arith.constant 0 : index
    %c0_2 = arith.constant 0 : index
    %0 = vector.load %arg3[%c0, %c0_0, %c0_1, %c0_2] : memref<1x4x2x128xf32, #tpu.memory_space<vmem>>, vector<1x1x2x128xf32>
    %1 = vector.shape_cast %0 : vector<1x1x2x128xf32> to vector<2x128xf32>
    %c0_3 = arith.constant 0 : index
    %2 = memref.load %arg2[%c0_3] : memref<4xf32, #tpu.memory_space<smem>>
    %3 = vector.broadcast %2 : f32 to vector<2x128xf32>
    %c0_4 = arith.constant 0 : index
    %c1 = arith.constant 1 : index
    %c0_5 = arith.constant 0 : index
    %c0_6 = arith.constant 0 : index
    %4 = vector.load %arg3[%c0_4, %c1, %c0_5, %c0_6] : memref<1x4x2x128xf32, #tpu.memory_space<vmem>>, vector<1x1x2x128xf32>
    %5 = vector.shape_cast %4 : vector<1x1x2x128xf32> to vector<2x128xf32>
    %6 = arith.cmpf ogt, %5, %1 : vector<2x128xf32>
    %c1_7 = arith.constant 1 : index
    %7 = memref.load %arg2[%c1_7] : memref<4xf32, #tpu.memory_space<smem>>
    %8 = vector.broadcast %7 : f32 to vector<2x128xf32>
    %9 = arith.select %6, %8, %3 : vector<2x128xi1>, vector<2x128xf32>
    %10 = arith.maximumf %1, %5 : vector<2x128xf32>
    %c0_8 = arith.constant 0 : index
    %c2 = arith.constant 2 : index
    %c0_9 = arith.constant 0 : index
    %c0_10 = arith.constant 0 : index
    %11 = vector.load %arg3[%c0_8, %c2, %c0_9, %c0_10] : memref<1x4x2x128xf32, #tpu.memory_space<vmem>>, vector<1x1x2x128xf32>
    %12 = vector.shape_cast %11 : vector<1x1x2x128xf32> to vector<2x128xf32>
    %13 = arith.cmpf ogt, %12, %10 : vector<2x128xf32>
    %c2_11 = arith.constant 2 : index
    %14 = memref.load %arg2[%c2_11] : memref<4xf32, #tpu.memory_space<smem>>
    %15 = vector.broadcast %14 : f32 to vector<2x128xf32>
    %16 = arith.select %13, %15, %9 : vector<2x128xi1>, vector<2x128xf32>
    %17 = arith.maximumf %10, %12 : vector<2x128xf32>
    %c0_12 = arith.constant 0 : index
    %c3 = arith.constant 3 : index
    %c0_13 = arith.constant 0 : index
    %c0_14 = arith.constant 0 : index
    %18 = vector.load %arg3[%c0_12, %c3, %c0_13, %c0_14] : memref<1x4x2x128xf32, #tpu.memory_space<vmem>>, vector<1x1x2x128xf32>
    %19 = vector.shape_cast %18 : vector<1x1x2x128xf32> to vector<2x128xf32>
    %20 = arith.cmpf ogt, %19, %17 : vector<2x128xf32>
    %c3_15 = arith.constant 3 : index
    %21 = memref.load %arg2[%c3_15] : memref<4xf32, #tpu.memory_space<smem>>
    %22 = vector.broadcast %21 : f32 to vector<2x128xf32>
    %23 = arith.select %20, %22, %16 : vector<2x128xi1>, vector<2x128xf32>
    %c0_16 = arith.constant 0 : index
    %c0_17 = arith.constant 0 : index
    %c0_18 = arith.constant 0 : index
    %c0_19 = arith.constant 0 : index
    %24 = vector.load %arg7[%c0_16, %c0_17, %c0_18, %c0_19] : memref<1x1x2x128xf32, #tpu.memory_space<vmem>>, vector<1x1x2x128xf32>
    %25 = vector.shape_cast %24 : vector<1x1x2x128xf32> to vector<2x128xf32>
    %26 = vector.shape_cast %23 : vector<2x128xf32> to vector<1x1x2x128xf32>
    tpu.vector_store %arg7[%c0_16, %c0_17, %c0_18, %c0_19], %26 {strides = array<i32>} : memref<1x1x2x128xf32, #tpu.memory_space<vmem>>, vector<1x1x2x128xf32>,
    %c0_20 = arith.constant 0 : index
    %c0_21 = arith.constant 0 : index
    %c0_22 = arith.constant 0 : index
    %c0_23 = arith.constant 0 : index
    %27 = vector.load %arg4[%c0_20, %c0_21, %c0_22, %c0_23] : memref<1x3x2x128xf32, #tpu.memory_space<vmem>>, vector<1x3x2x128xf32>
    %28 = vector.shape_cast %27 : vector<1x3x2x128xf32> to vector<3x2x128xf32>
    %c0_24 = arith.constant 0 : index
    %c0_25 = arith.constant 0 : index
    %c0_26 = arith.constant 0 : index
    %c0_27 = arith.constant 0 : index
    %29 = vector.load %arg5[%c0_24, %c0_25, %c0_26, %c0_27] : memref<1x3x2x128xf32, #tpu.memory_space<vmem>>, vector<1x3x2x128xf32>
    %30 = vector.shape_cast %29 : vector<1x3x2x128xf32> to vector<3x2x128xf32>
    %31 = vector.shape_cast %23 : vector<2x128xf32> to vector<1x2x128xf32>
    %32 = arith.subf %30, %28 : vector<3x2x128xf32>
    %33 = vector.broadcast %31 : vector<1x2x128xf32> to vector<3x2x128xf32>
    %34 = arith.mulf %33, %32 : vector<3x2x128xf32>
    %35 = arith.addf %28, %34 : vector<3x2x128xf32>
    %c0_28 = arith.constant 0 : index
    %c0_29 = arith.constant 0 : index
    %c0_30 = arith.constant 0 : index
    %c0_31 = arith.constant 0 : index
    %36 = vector.load %arg6[%c0_28, %c0_29, %c0_30, %c0_31] : memref<1x3x2x128xf32, #tpu.memory_space<vmem>>, vector<1x3x2x128xf32>
    %37 = vector.shape_cast %36 : vector<1x3x2x128xf32> to vector<3x2x128xf32>
    %38 = vector.shape_cast %35 : vector<3x2x128xf32> to vector<1x3x2x128xf32>
    tpu.vector_store %arg6[%c0_28, %c0_29, %c0_30, %c0_31], %38 {strides = array<i32>} : memref<1x3x2x128xf32, #tpu.memory_space<vmem>>, vector<1x3x2x128xf32>,
    return
  }
  func.func @transform_0(%arg0: i32, %arg1: i32) -> i32 {
    %c0_i32 = arith.constant 0 : i32
    %c0_i32_0 = arith.constant 0 : i32
    return %c0_i32 : i32
  }
  func.func @transform_1(%arg0: i32, %arg1: i32) -> (i32, i32, i32, i32) {
    %c0_i32 = arith.constant 0 : i32
    %c0_i32_0 = arith.constant 0 : i32
    %c0_i32_1 = arith.constant 0 : i32
    return %arg0, %c0_i32, %arg1, %c0_i32_0 : i32, i32, i32, i32
  }
  func.func @transform_2(%arg0: i32, %arg1: i32) -> (i32, i32, i32, i32) {
    %c0_i32 = arith.constant 0 : i32
    %c0_i32_0 = arith.constant 0 : i32
    %c0_i32_1 = arith.constant 0 : i32
    return %arg0, %c0_i32, %arg1, %c0_i32_0 : i32, i32, i32, i32
  }
  func.func @transform_3(%arg0: i32, %arg1: i32) -> (i32, i32, i32, i32) {
    %c0_i32 = arith.constant 0 : i32
    %c0_i32_0 = arith.constant 0 : i32
    %c0_i32_1 = arith.constant 0 : i32
    return %arg0, %c0_i32, %arg1, %c0_i32_0 : i32, i32, i32, i32
  }
  func.func @transform_4(%arg0: i32, %arg1: i32) -> (i32, i32, i32, i32) {
    %c0_i32 = arith.constant 0 : i32
    %c0_i32_0 = arith.constant 0 : i32
    %c0_i32_1 = arith.constant 0 : i32
    return %arg0, %c0_i32, %arg1, %c0_i32_0 : i32, i32, i32, i32
  }
  func.func @transform_5(%arg0: i32, %arg1: i32) -> (i32, i32, i32, i32) {
    %c0_i32 = arith.constant 0 : i32
    %c0_i32_0 = arith.constant 0 : i32
    %c0_i32_1 = arith.constant 0 : i32
    return %arg0, %c0_i32, %arg1, %c0_i32_0 : i32, i32, i32, i32
  }
}

</mosaic_0001>

<bundles_post_ra>
// kernel: tpu_custom_call.1
= control target key start
LH: loop header
LB: loop body
LE: loop exit
PB: predicated region body
PF: predicated region fallthrough
CT: control target
= control target key end

     0   :  { %s1249_s0 = inlined_call_operand.hbm [shape: f32[4], index: 0, kind: input, shape index: {}]   ;;  %s1250_s1 = inlined_call_operand.hbm [shape: f32[2,4,2,128], index: 1, kind: input, shape index: {}]   ;;  %s1251_s2 = inlined_call_operand.hbm [shape: f32[2,3,2,128], index: 2, kind: input, shape index: {}]   ;;  %s1252_s3 = inlined_call_operand.hbm [shape: f32[2,3,2,128], index: 3, kind: input, shape index: {}]   ;;  %s1253_s4 = inlined_call_operand.hbm [shape: f32[2,3,2,128], index: 4, kind: output, shape index: {0}]   ;;  %s1254_s5 = inlined_call_operand.hbm [shape: f32[2,1,2,128], index: 5, kind: output, shape index: {1}]  }
   0x1   :  { %1266 = sst [smem:[#allocation23_spill]] %s1249_s0 }
   0x2   :  { %1267 = sst [smem:[#allocation24_spill]] %s1251_s2 }
   0x3   :  { %11 = vsyncpa [#allocation5], 0 }
   0x4   :  { %12 = vsyncpa [#allocation3], 0 }
   0x5   :  { %14 = vsyncpa [#allocation3 + $0x1], 0 }
   0x6   :  { %15 = vsyncpa [#allocation8], 0 }
   0x7   :  { %17 = vsyncpa [#allocation8 + $0x1], 0 }
   0x8   :  { %18 = vsyncpa [#allocation4], 0 }
   0x9   :  { %20 = vsyncpa [#allocation4 + $0x1], 0 }
   0xa   :  { %21 = vsyncpa [#allocation12], 0 }
   0xb   :  { %23 = vsyncpa [#allocation12 + $0x1], 0  ;;  %s1021_s18 = smov 0   ;;  %s1023_s19 = smov 0  }
   0xc   :  { %s1025_s20 = smov 0   ;;  %s1027_s21 = smov 0  }
   0xd   :  { %s1029_s22 = smov 0   ;;  %s1031_s23 = smov 0  }
   0xe LB: > { %1268 = sst [smem:[#allocation18_spill]] %s972_s20  ;;  %s41_s24 = sadd.s32 1, %s980_s22  ;;  %s984_s23 = sphi %s1031_s23, %s29_s23   ;;  %s980_s22 = sphi %s1029_s22, %s1292_s22   ;;  %s976_s21 = sphi %s1027_s21, %s1291_s21   ;;  %s972_s20 = sphi %s1025_s20, %s1287_s20   ;;  %s968_s19 = sphi %s1023_s19, %s1290_s19   ;;  %s964_s18 = sphi %s1021_s18, %s1289_s18  }
   0xf   : > { %1269 = sst [smem:[#allocation19_spill]] %s984_s23  ;;  %s71_s25 = sadd.s32 1, %s972_s20 }
  0x10   : > { %p43_p0 = scmp.ge.s32.totalorder %s41_s24, 2  ;;  %p78_p1 = scmp.ne.s32.totalorder %s972_s20, %s968_s19 }
  0x11   : > { %p79_p2 = scmp.eq.s32.totalorder %s984_s23, 0  ;;  %p637_p3 = scmp.ge.s32.totalorder %s984_s23, 2 }
  0x12   : > { %s1294_s24 = smov (%p43_p0, %s41_s24), 0  ;;  %p701_p5 = scmp.lt.s32.totalorder %s984_s23, 2 }
  0x13   : > { %1270 = sst [smem:[#allocation20_spill]] %s1294_s24  ;;  %p80_p4 = por %p79_p2, %p78_p1 }
  0x14   : > { %s66_s26 = ssub.s32 %s980_s22, %s1294_s24  ;;  %s1066_s27 = sand.u32 1, %s972_s20  }
  0x15   : > { %p69_p6 = scmp.eq.s32.totalorder %s66_s26, 0  ;;  %p1068_p7 = pnand %p701_p5, %p80_p4 }
  0x16   : > { %s253_s30 = sand.u32 1, %s984_s23   ;;  %s1255_s6 = smul.u32 6, %s1066_s27 }
  0x17   : > { %s1073_s29 = scalar_select %p69_p6, %s972_s20, %s71_s25  }
  0x18   : > { %s1256_s7 = smul.u32 6, %s980_s22  ;;  %s1273_s2 = sld [smem:[#allocation24_spill]] }
  0x19   : > { %1272 = sst [smem:[#allocation21_spill]] %s1073_s29  ;;  %s257_s11 = scalar_lea.vmem [#allocation7], %s1255_s6 }
  0x1a   : > { %s266_s12 = sshll.u32 %s257_s11, 4  ;;  %s1085_s14 = scalar_lea.sflag [#allocation8], %s253_s30  ;;  %s267_s12 = int_to_ptr.vmem [resolvable:$true] %s266_s12 }
  0x1b   : > { %s1257_s15 = smov 32   ;;  %s1259_s16 = smov 2  }
  0x1c   : > { %s1094_s17 = sadd.s32 4294967295, %s984_s23   ;;  %s634_s25 = sadd.s32 4294967294, %s984_s23  }
  0x1d   : > { %p84_p8 = scmp.ne.s32.totalorder %s968_s19, %s964_s18  ;;  %p85_p9 = scmp.eq.s32.totalorder %s1094_s17, 0 }
  0x1e   : > { %s263_s10 = scalar_lea.hbm %s1273_s2, %s1256_s7  ;;  %p166_p10 = scmp.eq.s32.totalorder %s1094_s17, 1 }
  0x1f   : > { %s264_s13 = sshll.u32 %s263_s10, 4  ;;  %p172_p11 = scmp.eq.s32.totalorder %s634_s25, 1  ;;  %s265_s13 = int_to_ptr.hbm [resolvable:$true] %s264_s13 }
  0x20   : > { %689 = dma.hbm_to_vmem [thread:$0]  (!%p1068_p7), %s265_s13, 96, %s267_s12, %s1085_s14, %s1257_s15, %s1257_s15, %s1259_s16  }
  0x21   : > { %p635_p12 = scmp.ge.s32.totalorder %s984_s23, 1  ;;  %p1104_p13 = por %p85_p9, %p84_p8 }
  0x22   : > { %p1111_p0 = por %p166_p10, %p78_p1  ;;  %p1115_p2 = por %p172_p11, %p84_p8 }
  0x23   : > { %p207_p4 = scmp.lt.s32.totalorder %s984_s23, 3  ;;  %s1278_s0 = sld [smem:[#allocation23_spill]] }
  0x24   : > { %s1276_s8 = scalar_select %p1115_p2, 1, 0 }
  0x25   : > { %p1123_p5 = pnand %p635_p12, %p207_p4  ;;  %s638_s13 = sshll.u32 %s1066_s27, 3 }
  0x26   : > { %1277 = sst [smem:[#allocation22_spill]] %s1276_s8  ;;  %s658_s25 = sshll.u32 %s980_s22, 3 }
  0x27   : > { %p679_p1 = pneg %p1123_p5  ;;  %s240_s9 = scalar_lea.hbm %s1250_s1, %s658_s25 }
  0x28   : > { %s241_s10 = sshll.u32 %s240_s9, 4  ;;  %s234_s15 = scalar_lea.vmem [#allocation6], %s638_s13  ;;  %s242_s10 = int_to_ptr.hbm [resolvable:$true] %s241_s10 }
  0x29   : > { %s219_s11 = sshll.u32 %s1278_s0, 4  ;;  %p680_p6 = pnand %p679_p1, %p85_p9  ;;  %s220_s11 = int_to_ptr.hbm [resolvable:$true] %s219_s11 }
  0x2a   : > { %s243_s16 = sshll.u32 %s234_s15, 4  ;;  %s988_s0 = smov [#allocation2]   ;;  %s244_s16 = int_to_ptr.vmem [resolvable:$true] %s243_s16 }
  0x2b   : > { %682 = dma.hbm_to_smem (!%p680_p6), %s220_s11, 16, %s988_s0, [#allocation5]  }
  0x2c   : > { %s231_s2 = scalar_lea.sflag [#allocation3], %s1066_s27  ;;  %s1280_s24 = smov 2  }
  0x2d   : > { %s1281_s29 = smov 32   ;;  %s1282_s20 = smul.u32 6, %s980_s22 }
  0x2e   : > { %686 = dma.hbm_to_vmem [thread:$0]  (!%p1068_p7), %s242_s10, 128, %s244_s16, %s231_s2, %s1281_s29, %s1281_s29, %s1280_s24  }
  0x2f   : > { %s286_s6 = scalar_lea.hbm %s1252_s3, %s1282_s20  ;;  %s1283_s7 = smul.u32 6, %s1066_s27 }
  0x30   : > { %s287_s13 = sshll.u32 %s286_s6, 4  ;;  %301 = sbr.rel (%p1123_p5) target bundleno = 97 (0x61), region = 36  ;;  %s288_s13 = int_to_ptr.hbm [resolvable:$true] %s287_s13 }
  0x31   : > { %s280_s25 = scalar_lea.vmem [#allocation9], %s1283_s7 }
  0x32   : > { %s289_s9 = sshll.u32 %s280_s25, 4  ;;  %s290_s9 = int_to_ptr.vmem [resolvable:$true] %s289_s9 }
  0x33   : > { %692 = dma.hbm_to_vmem [thread:$0]  (!%p1068_p7), %s288_s13, 96, %s290_s9, %s1085_s14, %s1281_s29, %s1281_s29, %s1280_s24  }
  0x35   : > { %943 = dma.done.wait (%p85_p9), [#allocation5], 16  }
  0x36   : > { %945 = vsyncadd (%p85_p9), [#allocation5], 4294967280  ;;  %s1162_s0 = sand.u32 1, %s968_s19  }
  0x37   : > { %s645_s2 = sshll.u32 %s1162_s0, 3  ;;  %s309_s20 = scalar_lea.sflag [#allocation3], %s1162_s0 }
  0x38   : > { %s312_s23 = scalar_lea.vmem [#allocation6], %s645_s2 }
  0x39   : > { %947 = dma.done.wait (%p1104_p13), %s309_s20, 128  }
  0x3a   : > { %949 = vsyncadd (%p1104_p13), %s309_s20, 4294967168  ;;  %s318_s24 = sand.u32 1, %s1094_s17   ;;  %s1172_s27 = smul.u32 6, %s1162_s0 }
  0x3b   : > { %s319_s28 = scalar_lea.sflag [#allocation8], %s318_s24 }
  0x3c   : > { %s322_s29 = scalar_lea.vmem [#allocation7], %s1172_s27 }
  0x3d   : > { %951 = dma.done.wait (%p1104_p13), %s319_s28, 192  }
  0x3e   : > { %953 = vsyncadd (%p1104_p13), %s319_s28, 4294967104  ;;  %s332_s14 = scalar_lea.vmem [#allocation9], %s1172_s27 }
  0x3f   : > { %338 = sfence }
  0x40   : > { %s646_s15 = sshll.u32 %s1162_s0, 1  ;;  %v376_v0 = vld [vmem:[%s312_s23] sm:$0x3]  ;;  %s377_s16 = sld [smem:[#allocation2]]  ;;  %v647_v1 = vld [vmem:[%s312_s23 + $0x2] sm:$0x3] }
  0x41   : > { %s648_s8 = sld [smem:[#allocation2 + $0x1]]  ;;  %v385_v2 = vmax.f32 %v376_v0, %v647_v1  ;;  %v649_v3 = vld [vmem:[%s312_s23 + $0x4] sm:$0x3]  ;;  %v400_v4 = vld [vmem:[%s322_s29] sm:$0x3]  ;;  %vm381_vm0 = vcmp.gt.f32.partialorder %v647_v1, %v376_v0  ;;  %s375_s26 = scalar_lea.vmem [#allocation11], %s646_s15 }
  0x42   : > { %s650_s17 = sld [smem:[#allocation2 + $0x2]]  ;;  %v651_v6 = vld [vmem:[%s312_s23 + $0x6] sm:$0x3]  ;;  %v403_v7 = vld [vmem:[%s332_s14] sm:$0x3]  ;;  %s455_s12 = sshll.u32 %s375_s26, 4  ;;  %s1182_s12 = int_to_ptr.vmem [resolvable:$true] %s455_s12 }
  0x43   : > { %s652_s11 = sld [smem:[#allocation2 + $0x3]]  ;;  %v392_v5 = vmax.f32 %v385_v2, %v649_v3  ;;  %v401_v8 = vld [vmem:[%s322_s29 + $0x2] sm:$0x3]  ;;  %v404_v9 = vld [vmem:[%s332_s14 + $0x2] sm:$0x3]  ;;  %vm388_vm1 = vcmp.gt.f32.partialorder %v649_v3, %v385_v2  ;;  %v406_v12 = vsub.f32 %v403_v7, %v400_v4  ;;  %s664_s10 = smul.u32 6, %s976_s21 }
  0x44   : > { %v402_v10 = vld [vmem:[%s322_s29 + $0x4] sm:$0x3]  ;;  %v405_v13 = vld [vmem:[%s332_s14 + $0x4] sm:$0x3]  ;;  %v407_v15 = vsub.f32 %v404_v9, %v401_v8  ;;  %s1185_s6 = scalar_lea.vmem [#allocation10], %s1172_s27  ;;  %s655_s2 = sshll.u32 %s976_s21, 1 }
  0x45   : > { %vm395_vm2 = vcmp.gt.f32.partialorder %v651_v6, %v392_v5  ;;  %v408_v16 = vsub.f32 %v405_v13, %v402_v10  ;;  %s437_s7 = sshll.u32 %s1185_s6, 4  ;;  %s1191_s13 = scalar_lea.hbm %s1253_s4, %s664_s10  ;;  %s438_s7 = int_to_ptr.vmem [resolvable:$true] %s437_s7 }
  0x46   : > { %v378_v11 = vstv %s377_s16  ;;  %s453_s24 = scalar_lea.hbm %s1254_s5, %s655_s2  ;;  %s439_s28 = sshll.u32 %s1191_s13, 4  ;;  %s440_s28 = int_to_ptr.hbm [resolvable:$true] %s439_s28 }
  0x47   : > { %v383_v14 = vstv %s648_s8  ;;  %s457_s27 = sshll.u32 %s453_s24, 4  ;;  %s424_s29 = scalar_lea.sflag [#allocation12], %s1162_s0  ;;  %s458_s27 = int_to_ptr.hbm [resolvable:$true] %s457_s27 }
  0x48   : > { %v384_v17 = vsel %vm381_vm0, %v383_v14, %v378_v11  ;;  %v390_v18 = vstv %s650_s17  ;;  %s876_s14 = sshra.s32 %s458_s27, 4  ;;  %s882_s8 = scalar_lea.hbm %s1254_s5, 4  ;;  %s877_s14 = int_to_ptr.hbm [resolvable:$true] %s876_s14 }
  0x49   : > { %v391_v19 = vsel %vm388_vm1, %v390_v18, %v384_v17  ;;  %v397_v20 = vstv %s652_s11  ;;  %s878_s21 = scalar_lea.hbm %s877_s14, 2  ;;  %p883_p10 = scmp.lt.s32.totalorder %s877_s14, %s1254_s5 }
  0x4a   : > { %v398_v21 = vsel %vm395_vm2, %v397_v20, %v391_v19  ;;  %p879_p7 = scmp.ne.s32.totalorder %s877_s14, %s878_s21  ;;  %p884_p11 = scmp.lt.s32.totalorder %s882_s8, %s878_s21 }
  0x4b   : > { %399 = vst [vmem:[%s375_s26] sm:$0x3] %v398_v21  ;;  %v409_v22 = vmul.f32 %v406_v12, %v398_v21  ;;  %v410_v23 = vmul.f32 %v407_v15, %v398_v21  ;;  %v411_v24 = vmul.f32 %v408_v16, %v398_v21 }
  0x4c   : > { %p880_p8 = pnand %p879_p7, %p1111_p0  ;;  %p885_p12 = por %p884_p11, %p883_p10 }
  0x4d   : > { %v412_v25 = vadd.f32 %v409_v22, %v400_v4  ;;  %v413_v26 = vadd.f32 %v410_v23, %v401_v8  ;;  %v414_v27 = vadd.f32 %v411_v24, %v402_v10 }
  0x4e   : > { %p881_p9 = pneg %p880_p8 }
  0x50   : > { %p886_p13 = pnand %p885_p12, %p881_p9 }
  0x52   : > { %889 = shalt.err (!%p886_p13)
}
  0x53   : > { %676 = dma.vmem_to_hbm [thread:$0]  (%p1111_p0), %s1182_s12, 32, %s458_s27, %s424_s29   ;;  %415 = vst [vmem:[%s1185_s6] sm:$0x3] %v412_v25 }
  0x54   : > { %416 = vst [vmem:[%s1185_s6 + $0x2] sm:$0x3] %v413_v26  ;;  %s419_s26 = scalar_lea.sflag [#allocation4], %s1162_s0  ;;  %s904_s10 = sshra.s32 %s440_s28, 4  ;;  %s905_s10 = int_to_ptr.hbm [resolvable:$true] %s904_s10 }
  0x55   : > { %417 = vst [vmem:[%s1185_s6 + $0x4] sm:$0x3] %v414_v27  ;;  %s906_s25 = scalar_lea.hbm %s905_s10, 6  ;;  %s910_s2 = scalar_lea.hbm %s1253_s4, 12 }
  0x56   : > { %p907_p4 = scmp.ne.s32.totalorder %s905_s10, %s906_s25  ;;  %p911_p6 = scmp.lt.s32.totalorder %s905_s10, %s1253_s4 }
  0x57   : > { %p912_p7 = scmp.lt.s32.totalorder %s910_s2, %s906_s25 }
  0x58   : > { %p908_p5 = pnand %p907_p4, %p1111_p0 }
  0x59   : > { %p913_p8 = por %p912_p7, %p911_p6 }
  0x5a   : > { %p909_p1 = pneg %p908_p5 }
  0x5c   : > { %p914_p9 = pnand %p913_p8, %p909_p1 }
  0x5e   : > { %917 = shalt.err (!%p914_p9)
}
  0x5f   : > { %s989_s0 = smov 32   ;;  %s990_s6 = smov 2  }
  0x60   : > { %675 = dma.vmem_to_hbm [thread:$0]  (%p1111_p0), %s438_s7, 96, %s440_s28, %s419_s26, %s989_s0, %s989_s0, %s990_s6  }
  0x61 PF: > { %s1285_s24 = sld [smem:[#allocation19_spill]]  ;;  %s469_s27 = sand.u32 1, %s964_s18  }
  0x62   : > { %p694_p10 = pnand %p637_p3, %p1115_p2  ;;  %s470_s29 = scalar_lea.sflag [#allocation4], %s469_s27 }
  0x64   : > { %p695_p11 = pneg %p694_p10 }
  0x66   : > { %955 = dma.done.wait (%p695_p11), %s470_s29, 96  }
  0x67   : > { %957 = vsyncadd (%p695_p11), %s470_s29, 4294967200  ;;  %s480_s14 = scalar_lea.sflag [#allocation12], %s469_s27 }
  0x68   : > { %959 = dma.done.wait (%p695_p11), %s480_s14, 32  }
  0x69   : > { %961 = vsyncadd (%p695_p11), %s480_s14, 4294967264  ;;  %s29_s23 = sadd.s32 1, %s1285_s24   ;;  %s1286_s30 = sld [smem:[#allocation18_spill]] }
  0x6a   : > { %p26_p12 = scmp.ge.s32.totalorder %s29_s23, 4   ;;  %s1287_s20 = sld [smem:[#allocation21_spill]] }
  0x6b   : > { %s1288_s7 = sld [smem:[#allocation20_spill]]  ;;  %s1289_s18 = smov %s968_s19 }
  0x6c   : > { %s1291_s21 = smov %s980_s22 }
  0x6d   :  { %28 = sbr.rel (!%p26_p12) target bundleno = 14 (0xe), region = 130 }
  0x6f   : > { %s1290_s19 = smov %s1286_s30 }
  0x71   : > { %s1292_s22 = smov %s1288_s7 }
  0x72   :  { %486 = vsyncpa [#allocation3], 1 }
  0x73   :  { %488 = vsyncpa [#allocation3 + $0x1], 1 }
  0x74   :  { %489 = vsyncpa [#allocation8], 1 }
  0x75   :  { %491 = vsyncpa [#allocation8 + $0x1], 1 }
  0x76   :  { %492 = vsyncpa [#allocation4], 1 }
  0x77   :  { %494 = vsyncpa [#allocation4 + $0x1], 1 }
  0x78   :  { %495 = vsyncpa [#allocation12], 1 }
  0x79   :  { %497 = vsyncpa [#allocation12 + $0x1], 1 }
  0x7a   :  { %498 = vsyncpa [#allocation5], 1 }
  0x7b   :  { %500 = vsyncpa [#allocation5 + $0x1], 1 }

</bundles_post_ra>
